<compile_context>
chip_gen: v7x
topology: tpu7x:2x2x1
jax: 0.10.0
libtpu: 0.0.40
codegen_flags: <defaults>
</compile_context>

<pallas_src>
import jax
import jax.numpy as jnp
from jax.experimental import pallas as pl
from jax.experimental.pallas import tpu as pltpu

H_IN = 768        # BERT pooler_output width
H_MID = 512       # fc1 output
N_CLS = 51        # fc2 output / number of classes
N_CLS_PAD = 128   # lane-dense padded class axis (do NOT raise to 256: fc2 is ~14% of
                  # FLOPs and a wider pad only doubles output writeback)
NEG_BIG = -1e30   # drives padded logits far below the real ones.
                  # NOTE: safe while the bias/logit path is f32 (or bf16); would
                  # overflow if anyone switches this path to fp16.
B_ALIGN = 16      # sublane multiple for bf16 activations


def _head_kernel(x_ref, w1_ref, b1_ref, w2_ref, b2_ref, o_ref):
    # x_ref:  (TB, 768) bf16   w1_ref: (768, 512) bf16   b1_ref: (1, 512) f32
    # w2_ref: (512, 128) bf16  b2_ref: (1, 128)  f32     o_ref:  (TB, 128) f32

    # fc1 + ReLU (MXU bf16 matmul, f32 accumulate)
    h = jnp.dot(x_ref[...], w1_ref[...], preferred_element_type=jnp.float32) + b1_ref[...]
    h = jnp.maximum(h, 0.0)

    # dropout(p=0.1) is identity at inference time (predict path) -> no-op.

    # fc2 (padded columns have zero weights and bias -1e30)
    logits = jnp.dot(h.astype(jnp.bfloat16), w2_ref[...],
                     preferred_element_type=jnp.float32) + b2_ref[...]

    # LogSoftmax over the (padded) class axis; padded logits ~ -1e30 contribute
    # exp(...) == 0, so the normalizer over the real 51 classes is exact.
    m = jnp.max(logits, axis=-1, keepdims=True)
    shifted = logits - m
    lse = jnp.log(jnp.sum(jnp.exp(shifted), axis=-1, keepdims=True))
    o_ref[...] = (shifted - lse).astype(o_ref.dtype)


def _choose_tiling(B, tb_max):
    """Pick (TB, num_tiles, B_pad): TB multiple of 16, minimal padding, >=2 tiles when possible."""
    B_aligned = max(B_ALIGN, pl.cdiv(B, B_ALIGN) * B_ALIGN)
    num_tiles = pl.cdiv(B_aligned, tb_max)
    # v7x megacore: keep at least 2 grid tiles so both TensorCores get work,
    # whenever the batch is large enough to split into two aligned tiles.
    if num_tiles < 2 and B_aligned >= 2 * B_ALIGN:
        num_tiles = 2
    tb = pl.cdiv(B, num_tiles)
    tb = max(B_ALIGN, pl.cdiv(tb, B_ALIGN) * B_ALIGN)
    return tb, num_tiles, tb * num_tiles


def bert_arch_head(cls_hs, w1, b1, w2, b2, *, tb=512):
    """cls_hs: (B, 768) f32; weights in [in, out] layout -> (B, 51) log-probabilities."""
    B = cls_hs.shape[0]
    TB, num_tiles, B_pad = _choose_tiling(B, tb)

    # --- batch padding fused with the bf16 cast (single pad-of-convert, no extra
    #     zeros().at[].set() pass of x over HBM) ---
    x = cls_hs.astype(jnp.bfloat16)
    if B_pad != B:
        x = jnp.pad(x, ((0, B_pad - B), (0, 0)))

    # --- class padding: W2 -> (512, 128) zeros, b2 -> (1, 128) with -1e30 pad ---
    w2p = jnp.zeros((H_MID, N_CLS_PAD), w2.dtype).at[:, :N_CLS].set(w2)
    b2p = jnp.full((1, N_CLS_PAD), NEG_BIG, jnp.float32).at[0, :N_CLS].set(
        b2.astype(jnp.float32))
    b1_2d = b1.astype(jnp.float32).reshape(1, H_MID)

    # --- weights to bf16 (halve HBM traffic; MXU-native); biases stay f32 ---
    w1b = w1.astype(jnp.bfloat16)
    w2b = w2p.astype(jnp.bfloat16)

    grid = (num_tiles,)
    flops = 2 * B_pad * (H_IN * H_MID + H_MID * N_CLS_PAD)
    transcendentals = B_pad * (N_CLS_PAD + 1)          # exp per padded class + log per row
    bytes_accessed = (
        B_pad * H_IN * 2                               # x in (bf16)
        + H_IN * H_MID * 2 + H_MID * 4                 # W1 bf16 + b1 f32
        + H_MID * N_CLS_PAD * 2 + N_CLS_PAD * 4        # W2 bf16 + b2 f32
        + B_pad * N_CLS_PAD * 4                        # out (f32; keep full precision for NLL)
    )

    out = pl.pallas_call(
        _head_kernel,
        out_shape=jax.ShapeDtypeStruct((B_pad, N_CLS_PAD), jnp.float32),
        grid=grid,
        in_specs=[
            pl.BlockSpec((TB, H_IN), lambda i: (i, 0)),          # x: pipelined per tile
            pl.BlockSpec((H_IN, H_MID), lambda i: (0, 0)),       # W1: VMEM-resident
            pl.BlockSpec((1, H_MID), lambda i: (0, 0)),          # b1
            pl.BlockSpec((H_MID, N_CLS_PAD), lambda i: (0, 0)),  # W2
            pl.BlockSpec((1, N_CLS_PAD), lambda i: (0, 0)),      # b2
        ],
        out_specs=pl.BlockSpec((TB, N_CLS_PAD), lambda i: (i, 0)),
        compiler_params=pltpu.CompilerParams(
            dimension_semantics=("parallel",),  # shard batch tiles across TCs (v7x)
        ),
        cost_estimate=pl.CostEstimate(
            flops=flops,
            transcendentals=transcendentals,
            bytes_accessed=bytes_accessed,
        ),
    )(x, w1b, b1_2d, w2b, b2p)

    # strip batch padding and the padded class columns
    return out[:B, :N_CLS]


def init_params(key):
    """Deterministic synthetic parameters matching nn.Linear(768,512) / nn.Linear(512,51)."""
    k1, k2, k3, k4 = jax.random.split(key, 4)
    # stored already-transposed: [in, out]
    w1 = jax.random.normal(k1, (H_IN, H_MID), jnp.float32) * 0.02
    b1 = jax.random.normal(k2, (H_MID,), jnp.float32) * 0.02
    w2 = jax.random.normal(k3, (H_MID, N_CLS), jnp.float32) * 0.02
    b2 = jax.random.normal(k4, (N_CLS,), jnp.float32) * 0.02
    return w1, b1, w2, b2


if __name__ == "__main__":
    key = jax.random.PRNGKey(0)
    k_params, k_x = jax.random.split(key)

    # TODO(synk): the BERT backbone (self.bert(...)['pooler_output']) is not translated;
    # we synthesize the (B, 768) pooler output directly as the kernel input.
    B = 2
    cls_hs = jax.random.normal(k_x, (B, H_IN), jnp.float32)

    w1, b1, w2, b2 = init_params(k_params)

    out = bert_arch_head(cls_hs, w1, b1, w2, b2)
    out = jax.block_until_ready(out)
    assert out.shape == (B, N_CLS)

    # sanity check against a pure-JAX reference using the same bf16-rounded operands
    # (deliberate accuracy choice: x, h and weights are bf16 on the MXU, accumulation f32;
    #  differs from the PyTorch f32 reference by up to ~1e-2 in log-prob space).
    w1f = w1.astype(jnp.bfloat16).astype(jnp.float32)
    w2f = w2.astype(jnp.bfloat16).astype(jnp.float32)
    xb = cls_hs.astype(jnp.bfloat16).astype(jnp.float32)
    h_ref = jnp.maximum(xb @ w1f + b1, 0.0)
    logits_ref = h_ref.astype(jnp.bfloat16).astype(jnp.float32) @ w2f + b2
    ref = jax.nn.log_softmax(logits_ref, axis=1)
    err = float(jnp.max(jnp.abs(out - ref)))
    assert jnp.allclose(out, ref, atol=1e-2), err
    assert bool(jnp.all(jnp.isfinite(out)))

    # also exercise a larger / non-aligned batch to cover the multi-tile grid path
    B2 = 300
    cls_hs2 = jax.random.normal(jax.random.PRNGKey(7), (B2, H_IN), jnp.float32)
    out2 = jax.block_until_ready(bert_arch_head(cls_hs2, w1, b1, w2, b2))
    assert out2.shape == (B2, N_CLS)
    assert bool(jnp.all(jnp.isfinite(out2)))

    print("KERNEL_OK")
</pallas_src>

<mosaic_0001>
module attributes {stable_mosaic.version = 11 : i64} {
  func.func @_head_kernel(%arg0: i32, %arg1: memref<16x768xbf16, #tpu.memory_space<vmem>>, %arg2: memref<768x512xbf16, #tpu.memory_space<vmem>>, %arg3: memref<1x512xf32, #tpu.memory_space<vmem>>, %arg4: memref<512x128xbf16, #tpu.memory_space<vmem>>, %arg5: memref<1x128xf32, #tpu.memory_space<vmem>>, %arg6: memref<16x128xf32, #tpu.memory_space<vmem>>) attributes {dimension_semantics = [#tpu.dimension_semantics<parallel>], iteration_bounds = array<i64: 1>, scalar_prefetch = 0 : i64, scratch_operands = 0 : i64, tpu.core_type = #tpu.core_type<tc>, window_params = [{transform_indices = @transform_0, window_bounds = array<i64: 16, 768>}, {pipeline_mode = #tpu.pipeline_mode<synchronous>, transform_indices = @transform_1, window_bounds = array<i64: 768, 512>}, {pipeline_mode = #tpu.pipeline_mode<synchronous>, transform_indices = @transform_2, window_bounds = array<i64: 1, 512>}, {pipeline_mode = #tpu.pipeline_mode<synchronous>, transform_indices = @transform_3, window_bounds = array<i64: 512, 128>}, {pipeline_mode = #tpu.pipeline_mode<synchronous>, transform_indices = @transform_4, window_bounds = array<i64: 1, 128>}, {transform_indices = @transform_5, window_bounds = array<i64: 16, 128>}]} {
    %c0 = arith.constant 0 : index
    %c0_0 = arith.constant 0 : index
    %0 = vector.load %arg1[%c0, %c0_0] : memref<16x768xbf16, #tpu.memory_space<vmem>>, vector<16x768xbf16>
    %c0_1 = arith.constant 0 : index
    %c0_2 = arith.constant 0 : index
    %1 = vector.load %arg2[%c0_1, %c0_2] : memref<768x512xbf16, #tpu.memory_space<vmem>>, vector<768x512xbf16>
    %cst = arith.constant dense<0.000000e+00> : vector<16x512xf32>
    %2 = tpu.matmul %0, %1, %cst {dimension_numbers = #tpu.dot_dimension_numbers<[1], [0], [0], [1], [0, 0, 1, 1], [], []>} : vector<16x768xbf16>, vector<768x512xbf16>, vector<16x512xf32> -> vector<16x512xf32>
    %c0_3 = arith.constant 0 : index
    %c0_4 = arith.constant 0 : index
    %3 = vector.load %arg3[%c0_3, %c0_4] : memref<1x512xf32, #tpu.memory_space<vmem>>, vector<1x512xf32>
    %4 = vector.broadcast %3 : vector<1x512xf32> to vector<16x512xf32>
    %5 = arith.addf %2, %4 : vector<16x512xf32>
    %cst_5 = arith.constant 0.000000e+00 : f32
    %6 = vector.broadcast %cst_5 : f32 to vector<16x512xf32>
    %7 = arith.maximumf %5, %6 : vector<16x512xf32>
    %8 = arith.truncf %7 : vector<16x512xf32> to vector<16x512xbf16>
    %c0_6 = arith.constant 0 : index
    %c0_7 = arith.constant 0 : index
    %9 = vector.load %arg4[%c0_6, %c0_7] : memref<512x128xbf16, #tpu.memory_space<vmem>>, vector<512x128xbf16>
    %cst_8 = arith.constant dense<0.000000e+00> : vector<16x128xf32>
    %10 = tpu.matmul %8, %9, %cst_8 {dimension_numbers = #tpu.dot_dimension_numbers<[1], [0], [0], [1], [0, 0, 1, 1], [], []>} : vector<16x512xbf16>, vector<512x128xbf16>, vector<16x128xf32> -> vector<16x128xf32>
    %c0_9 = arith.constant 0 : index
    %c0_10 = arith.constant 0 : index
    %11 = vector.load %arg5[%c0_9, %c0_10] : memref<1x128xf32, #tpu.memory_space<vmem>>, vector<1x128xf32>
    %12 = vector.broadcast %11 : vector<1x128xf32> to vector<16x128xf32>
    %13 = arith.addf %10, %12 : vector<16x128xf32>
    %cst_11 = arith.constant dense<0xFF800000> : vector<16xf32>
    %14 = vector.multi_reduction <maximumf>, %13, %cst_11 [1] : vector<16x128xf32> to vector<16xf32>
    %15 = vector.shape_cast %14 : vector<16xf32> to vector<16x1xf32>
    %16 = vector.broadcast %15 : vector<16x1xf32> to vector<16x128xf32>
    %17 = arith.subf %13, %16 : vector<16x128xf32>
    %18 = math.exp %17 : vector<16x128xf32>
    %cst_12 = arith.constant dense<0.000000e+00> : vector<16xf32>
    %19 = vector.multi_reduction <add>, %18, %cst_12 [1] : vector<16x128xf32> to vector<16xf32>
    %20 = vector.shape_cast %19 : vector<16xf32> to vector<16x1xf32>
    %21 = math.log %20 : vector<16x1xf32>
    %22 = vector.broadcast %21 : vector<16x1xf32> to vector<16x128xf32>
    %23 = arith.subf %17, %22 : vector<16x128xf32>
    %c0_13 = arith.constant 0 : index
    %c0_14 = arith.constant 0 : index
    %24 = vector.load %arg6[%c0_13, %c0_14] : memref<16x128xf32, #tpu.memory_space<vmem>>, vector<16x128xf32>
    tpu.vector_store %arg6[%c0_13, %c0_14], %23 {strides = array<i32>} : memref<16x128xf32, #tpu.memory_space<vmem>>, vector<16x128xf32>,
    return
  }
  func.func @transform_0(%arg0: i32) -> (i32, i32) {
    %c0_i32 = arith.constant 0 : i32
    %c0_i32_0 = arith.constant 0 : i32
    return %arg0, %c0_i32 : i32, i32
  }
  func.func @transform_1(%arg0: i32) -> (i32, i32) {
    %c0_i32 = arith.constant 0 : i32
    %c0_i32_0 = arith.constant 0 : i32
    %c0_i32_1 = arith.constant 0 : i32
    return %c0_i32, %c0_i32_0 : i32, i32
  }
  func.func @transform_2(%arg0: i32) -> (i32, i32) {
    %c0_i32 = arith.constant 0 : i32
    %c0_i32_0 = arith.constant 0 : i32
    %c0_i32_1 = arith.constant 0 : i32
    return %c0_i32, %c0_i32_0 : i32, i32
  }
  func.func @transform_3(%arg0: i32) -> (i32, i32) {
    %c0_i32 = arith.constant 0 : i32
    %c0_i32_0 = arith.constant 0 : i32
    %c0_i32_1 = arith.constant 0 : i32
    return %c0_i32, %c0_i32_0 : i32, i32
  }
  func.func @transform_4(%arg0: i32) -> (i32, i32) {
    %c0_i32 = arith.constant 0 : i32
    %c0_i32_0 = arith.constant 0 : i32
    %c0_i32_1 = arith.constant 0 : i32
    return %c0_i32, %c0_i32_0 : i32, i32
  }
  func.func @transform_5(%arg0: i32) -> (i32, i32) {
    %c0_i32 = arith.constant 0 : i32
    %c0_i32_0 = arith.constant 0 : i32
    return %arg0, %c0_i32 : i32, i32
  }
}

</mosaic_0001>

<bundles_post_ra>
// kernel: tpu_custom_call.1
= control target key start
LH: loop header
LB: loop body
LE: loop exit
PB: predicated region body
PF: predicated region fallthrough
CT: control target
= control target key end

     0   :  { %10 = vsyncpa [#allocation3], 0  ;;  %s2766_s0 = inlined_call_operand.hbm [shape: bf16[16,768], index: 0, kind: input, shape index: {}]   ;;  %s2767_s1 = inlined_call_operand.hbm [shape: bf16[768,512], index: 1, kind: input, shape index: {}]   ;;  %s2768_s2 = inlined_call_operand.vmem [shape: f32[1,512], index: 2, kind: input, shape index: {}]   ;;  %s2769_s3 = inlined_call_operand.hbm [shape: bf16[512,128], index: 3, kind: input, shape index: {}]   ;;  %s2770_s4 = inlined_call_operand.vmem [shape: f32[1,128], index: 4, kind: input, shape index: {}]   ;;  %s2771_s5 = inlined_call_operand.hbm [shape: f32[16,128], index: 5, kind: output, shape index: {}]  }
   0x1   :  { %11 = vsyncpa [#allocation6], 0 }
   0x2   :  { %12 = vsyncpa [#allocation4], 0  ;;  %s2670_s18 = smov [#allocation5]   ;;  %s2576_s22 = scalar_lea.hbm %s2767_s1, 24576 }
   0x3   :  { %s30_s19 = sshll.u32 %s2670_s18, 4  ;;  %p2577_p0 = scmp.ne.s32.totalorder %s2767_s1, %s2576_s22  ;;  %s31_s19 = int_to_ptr.vmem [resolvable:$true] %s30_s19 }
   0x4   :  { %p2580_p1 = scmp.lt.u32.totalorder %s2576_s22, %s2767_s1 }
   0x6   :  { %p2582_p2 = pnand %p2580_p1, %p2577_p0 }
   0x8   :  { %2585 = shalt.err (!%p2582_p2)
}
   0x9   :  { %s2586_s27 = scalar_lea.vmem %s31_s19, 24576  ;;  %p2591_p4 = scmp.lt.s32.totalorder %s31_s19, %s31_s19 }
   0xa   :  { %p2587_p3 = scmp.ne.s32.totalorder %s31_s19, %s2586_s27  ;;  %p2592_p5 = scmp.lt.s32.totalorder %s2586_s27, %s2586_s27 }
   0xc   :  { %p2593_p6 = por %p2592_p5, %p2591_p4 }
   0xe   :  { %p2594_p7 = pnand %p2593_p6, %p2587_p3 }
  0x10   :  { %2597 = shalt.err (!%p2594_p7)
}
  0x11   :  { %s2671_s28 = smov 256   ;;  %s2672_s29 = smov 16  }
  0x12   :  { %36 = dma.hbm_to_vmem [thread:$0]  %s2767_s1, 24576, %s31_s19, [#allocation6], %s2671_s28, %s2671_s28, %s2672_s29  }
  0x13   :  { %s2673_s7 = smov [#allocation2]   ;;  %s2598_s11 = scalar_lea.hbm %s2766_s0, 768 }
  0x14   :  { %s18_s8 = sshll.u32 %s2673_s7, 4  ;;  %p2599_p8 = scmp.ne.s32.totalorder %s2766_s0, %s2598_s11  ;;  %s19_s8 = int_to_ptr.vmem [resolvable:$true] %s18_s8 }
  0x15   :  { %p2602_p9 = scmp.lt.u32.totalorder %s2598_s11, %s2766_s0 }
  0x17   :  { %p2604_p10 = pnand %p2602_p9, %p2599_p8 }
  0x19   :  { %2607 = shalt.err (!%p2604_p10)
}
  0x1a   :  { %s2608_s16 = scalar_lea.vmem %s19_s8, 768  ;;  %p2613_p12 = scmp.lt.s32.totalorder %s19_s8, %s19_s8 }
  0x1b   :  { %p2609_p11 = scmp.ne.s32.totalorder %s19_s8, %s2608_s16  ;;  %p2614_p13 = scmp.lt.s32.totalorder %s2608_s16, %s2608_s16 }
  0x1d   :  { %p2615_p0 = por %p2614_p13, %p2613_p12 }
  0x1f   :  { %p2616_p1 = pnand %p2615_p0, %p2609_p11 }
  0x21   :  { %2619 = shalt.err (!%p2616_p1)
}
  0x22   :  { %s2674_s1 = smov 384   ;;  %s2675_s17 = smov 24  }
  0x23   :  { %24 = dma.hbm_to_vmem [thread:$0]  %s2766_s0, 768, %s19_s8, [#allocation3], %s2674_s1, %s2674_s1, %s2675_s17  }
  0x24   :  { %s2676_s20 = smov [#allocation7]   ;;  %s2620_s24 = scalar_lea.hbm %s2769_s3, 4096 }
  0x25   :  { %s44_s21 = sshll.u32 %s2676_s20, 4  ;;  %p2621_p2 = scmp.ne.s32.totalorder %s2769_s3, %s2620_s24  ;;  %s45_s21 = int_to_ptr.vmem [resolvable:$true] %s44_s21 }
  0x26   :  { %p2624_p3 = scmp.lt.u32.totalorder %s2620_s24, %s2769_s3 }
  0x28   :  { %p2626_p4 = pnand %p2624_p3, %p2621_p2 }
  0x2a   :  { %2629 = shalt.err (!%p2626_p4)
}
  0x2b   :  { %s2630_s29 = scalar_lea.vmem %s45_s21, 4096  ;;  %p2635_p6 = scmp.lt.s32.totalorder %s45_s21, %s45_s21 }
  0x2c   :  { %p2631_p5 = scmp.ne.s32.totalorder %s45_s21, %s2630_s29  ;;  %p2636_p7 = scmp.lt.s32.totalorder %s2630_s29, %s2630_s29 }
  0x2e   :  { %p2637_p8 = por %p2636_p7, %p2635_p6 }
  0x30   :  { %p2638_p9 = pnand %p2637_p8, %p2631_p5 }
  0x32   :  { %2641 = shalt.err (!%p2638_p9)
}
  0x33   :  { %s2677_s0 = smov 64   ;;  %s2678_s30 = smov 4  }
  0x34   :  { %50 = dma.hbm_to_vmem [thread:$0]  %s2769_s3, 4096, %s45_s21, [#allocation6], %s2677_s0, %s2677_s0, %s2678_s30  }
  0x35   :  { %2664 = dma.done.wait [#allocation3], 768  }
  0x36   :  { %2665 = vsyncadd [#allocation3], 4294966528 }
  0x37   :  { %2666 = dma.done.wait [#allocation6], 28672  }
  0x38   :  { %2667 = vsyncadd [#allocation6], 4294938624  ;;  %v2239_v0 = vld [vmem:[#allocation5 + $0x4] ss:$16 sps:$4 sm:$0xff]   ;;  %v2241_v1 = vld [vmem:[#allocation5 + $0xc] ss:$16 sps:$4 sm:$0xff]  }
  0x39   :  { %1273 = vmatprep.subr.bf16.mxu0 %v2239_v0  ;;  %v2243_v2 = vld [vmem:[#allocation5] ss:$16 sps:$4 sm:$0xff]   ;;  %v2244_v3 = vld [vmem:[#allocation5 + $0x8] ss:$16 sps:$4 sm:$0xff]   ;;  %1402 = vmatprep.subr.bf16.mxu1 %v2241_v1  ;;  %v2245_v4 = vld [vmem:[#allocation5 + $0x24] ss:$16 sps:$4 sm:$0xff]  }
  0x3a   :  { %1274 = vmatpush1.bf16.msra.mxu0 %v2243_v2  ;;  %1403 = vmatpush1.bf16.msra.mxu1 %v2244_v3  ;;  %v2247_v5 = vld [vmem:[#allocation5 + $0x2c] ss:$16 sps:$4 sm:$0xff]   ;;  %v2249_v6 = vld [vmem:[#allocation5 + $0x20] ss:$16 sps:$4 sm:$0xff]   ;;  %v2250_v7 = vld [vmem:[#allocation5 + $0x28] ss:$16 sps:$4 sm:$0xff]  }
  0x3b   :  { %1275 = vmatprep.subr.bf16.mxu0 %v2245_v4  ;;  %1404 = vmatprep.subr.bf16.mxu1 %v2247_v5  ;;  %v2251_v8 = vld [vmem:[#allocation5 + $0x44] ss:$16 sps:$4 sm:$0xff]   ;;  %v2253_v9 = vld [vmem:[#allocation5 + $0x4c] ss:$16 sps:$4 sm:$0xff]   ;;  %v2255_v10 = vld [vmem:[#allocation5 + $0x40] ss:$16 sps:$4 sm:$0xff]  }
  0x3c   :  { %v2256_v11 = vld [vmem:[#allocation5 + $0x48] ss:$16 sps:$4 sm:$0xff]   ;;  %v2257_v12 = vld [vmem:[#allocation5 + $0x64] ss:$16 sps:$4 sm:$0xff]   ;;  %v2259_v13 = vld [vmem:[#allocation5 + $0x6c] ss:$16 sps:$4 sm:$0xff]  }
  0x3d   :  { %v2261_v14 = vld [vmem:[#allocation5 + $0x60] ss:$16 sps:$4 sm:$0xff]   ;;  %v2262_v15 = vld [vmem:[#allocation5 + $0x68] ss:$16 sps:$4 sm:$0xff]   ;;  %v2263_v16 = vld [vmem:[#allocation5 + $0x84] ss:$16 sps:$4 sm:$0xff]  }
  0x3e   :  { %1276 = vmatpush1.bf16.msra.mxu0 %v2249_v6  ;;  %1405 = vmatpush1.bf16.msra.mxu1 %v2250_v7  ;;  %v2265_v17 = vld [vmem:[#allocation5 + $0x8c] ss:$16 sps:$4 sm:$0xff]   ;;  %v2267_v18 = vld [vmem:[#allocation5 + $0x80] ss:$16 sps:$4 sm:$0xff]   ;;  %v2268_v19 = vld [vmem:[#allocation5 + $0x88] ss:$16 sps:$4 sm:$0xff]  }
  0x3f   :  { %1277 = vmatprep.subr.bf16.mxu0 %v2251_v8  ;;  %1406 = vmatprep.subr.bf16.mxu1 %v2253_v9  ;;  %v2269_v20 = vld [vmem:[#allocation5 + $0xa4] ss:$16 sps:$4 sm:$0xff]   ;;  %v2271_v21 = vld [vmem:[#allocation5 + $0xac] ss:$16 sps:$4 sm:$0xff]   ;;  %v2273_v22 = vld [vmem:[#allocation5 + $0xa0] ss:$16 sps:$4 sm:$0xff]  }
  0x40   :  { %v2274_v23 = vld [vmem:[#allocation5 + $0xa8] ss:$16 sps:$4 sm:$0xff]   ;;  %v2275_v24 = vld [vmem:[#allocation5 + $0xc4] ss:$16 sps:$4 sm:$0xff]   ;;  %v2277_v25 = vld [vmem:[#allocation5 + $0xcc] ss:$16 sps:$4 sm:$0xff]  }
  0x41   :  { %v2279_v26 = vld [vmem:[#allocation5 + $0xc0] ss:$16 sps:$4 sm:$0xff]   ;;  %v2280_v27 = vld [vmem:[#allocation5 + $0xc8] ss:$16 sps:$4 sm:$0xff]   ;;  %v2281_v28 = vld [vmem:[#allocation5 + $0xe4] ss:$16 sps:$4 sm:$0xff]  }
  0x42   :  { %1278 = vmatpush1.bf16.msra.mxu0 %v2255_v10  ;;  %1407 = vmatpush1.bf16.msra.mxu1 %v2256_v11  ;;  %v2283_v29 = vld [vmem:[#allocation5 + $0xec] ss:$16 sps:$4 sm:$0xff]   ;;  %v2285_v30 = vld [vmem:[#allocation5 + $0xe0] ss:$16 sps:$4 sm:$0xff]   ;;  %v2286_v31 = vld [vmem:[#allocation5 + $0xe8] ss:$16 sps:$4 sm:$0xff]  }
  0x43   :  { %1279 = vmatprep.subr.bf16.mxu0 %v2257_v12  ;;  %1408 = vmatprep.subr.bf16.mxu1 %v2259_v13  ;;  %v2287_v32 = vld [vmem:[#allocation5 + $0x104] ss:$16 sps:$4 sm:$0xff]   ;;  %v2289_v33 = vld [vmem:[#allocation5 + $0x10c] ss:$16 sps:$4 sm:$0xff]   ;;  %v2291_v34 = vld [vmem:[#allocation5 + $0x100] ss:$16 sps:$4 sm:$0xff]  }
  0x44   :  { %v2292_v35 = vld [vmem:[#allocation5 + $0x108] ss:$16 sps:$4 sm:$0xff]   ;;  %v2293_v36 = vld [vmem:[#allocation5 + $0x124] ss:$16 sps:$4 sm:$0xff]   ;;  %v2295_v37 = vld [vmem:[#allocation5 + $0x12c] ss:$16 sps:$4 sm:$0xff]  }
  0x45   :  { %v2297_v38 = vld [vmem:[#allocation5 + $0x120] ss:$16 sps:$4 sm:$0xff]   ;;  %v2298_v39 = vld [vmem:[#allocation5 + $0x128] ss:$16 sps:$4 sm:$0xff]   ;;  %v2299_v40 = vld [vmem:[#allocation5 + $0x144] ss:$16 sps:$4 sm:$0xff]  }
  0x46   :  { %1280 = vmatpush1.bf16.msra.mxu0 %v2261_v14  ;;  %1409 = vmatpush1.bf16.msra.mxu1 %v2262_v15  ;;  %v2301_v41 = vld [vmem:[#allocation5 + $0x14c] ss:$16 sps:$4 sm:$0xff]   ;;  %v2303_v42 = vld [vmem:[#allocation5 + $0x140] ss:$16 sps:$4 sm:$0xff]   ;;  %v2304_v43 = vld [vmem:[#allocation5 + $0x148] ss:$16 sps:$4 sm:$0xff]  }
  0x47   :  { %1281 = vmatprep.subr.bf16.mxu0 %v2263_v16  ;;  %1410 = vmatprep.subr.bf16.mxu1 %v2265_v17  ;;  %v2305_v44 = vld [vmem:[#allocation5 + $0x164] ss:$16 sps:$4 sm:$0xff]   ;;  %v2307_v45 = vld [vmem:[#allocation5 + $0x16c] ss:$16 sps:$4 sm:$0xff]   ;;  %v2309_v46 = vld [vmem:[#allocation5 + $0x160] ss:$16 sps:$4 sm:$0xff]  }
  0x48   :  { %v2310_v47 = vld [vmem:[#allocation5 + $0x168] ss:$16 sps:$4 sm:$0xff]   ;;  %v2337_v48 = vld [vmem:[#allocation2 + $0x4] ss:$24 sps:$4 sm:$0xff]   ;;  %v2315_v51 = vld [vmem:[#allocation5 + $0x180] ss:$16 sps:$4 sm:$0xff]  }
  0x49   :  { %v2311_v49 = vld [vmem:[#allocation5 + $0x184] ss:$16 sps:$4 sm:$0xff]   ;;  %v2313_v50 = vld [vmem:[#allocation5 + $0x18c] ss:$16 sps:$4 sm:$0xff]   ;;  %1305 = vmatprep.mubr.bf16.mxu0 %v2337_v48  ;;  %1434 = vmatprep.mubr.bf16.mxu1 %v2337_v48  ;;  %v2316_v52 = vld [vmem:[#allocation5 + $0x188] ss:$16 sps:$4 sm:$0xff]  }
  0x4a   :  { %1282 = vmatpush1.bf16.msra.mxu0 %v2267_v18  ;;  %1411 = vmatpush1.bf16.msra.mxu1 %v2268_v19  ;;  %v2317_v53 = vld [vmem:[#allocation5 + $0x1a4] ss:$16 sps:$4 sm:$0xff]   ;;  %v2319_v54 = vld [vmem:[#allocation5 + $0x1ac] ss:$16 sps:$4 sm:$0xff]   ;;  %v2321_v55 = vld [vmem:[#allocation5 + $0x1a0] ss:$16 sps:$4 sm:$0xff]  }
  0x4b   :  { %1283 = vmatprep.subr.bf16.mxu0 %v2269_v20  ;;  %1412 = vmatprep.subr.bf16.mxu1 %v2271_v21  ;;  %v2322_v56 = vld [vmem:[#allocation5 + $0x1a8] ss:$16 sps:$4 sm:$0xff]   ;;  %v2323_v57 = vld [vmem:[#allocation5 + $0x1c4] ss:$16 sps:$4 sm:$0xff]   ;;  %v2325_v58 = vld [vmem:[#allocation5 + $0x1cc] ss:$16 sps:$4 sm:$0xff]  }
  0x4c   :  { %v2327_v59 = vld [vmem:[#allocation5 + $0x1c0] ss:$16 sps:$4 sm:$0xff]   ;;  %v2328_v60 = vld [vmem:[#allocation5 + $0x1c8] ss:$16 sps:$4 sm:$0xff]   ;;  %v2329_v61 = vld [vmem:[#allocation5 + $0x1e4] ss:$16 sps:$4 sm:$0xff]  }
  0x4d   :  { %v2331_v62 = vld [vmem:[#allocation5 + $0x1ec] ss:$16 sps:$4 sm:$0xff]   ;;  %v2333_v63 = vld [vmem:[#allocation5 + $0x1e0] ss:$16 sps:$4 sm:$0xff]   ;;  %v2334_v0 = vld [vmem:[#allocation5 + $0x1e8] ss:$16 sps:$4 sm:$0xff]  }
  0x4e   :  { %1284 = vmatpush1.bf16.msra.mxu0 %v2273_v22  ;;  %1413 = vmatpush1.bf16.msra.mxu1 %v2274_v23  ;;  %v2340_v1 = vld [vmem:[#allocation5 + $0x204] ss:$16 sps:$4 sm:$0xff]   ;;  %v2343_v2 = vld [vmem:[#allocation5 + $0x20c] ss:$16 sps:$4 sm:$0xff]   ;;  %v2335_v3 = vld [vmem:[#allocation2] ss:$24 sps:$4 sm:$0xff]  }
  0x4f   :  { %1285 = vmatprep.subr.bf16.mxu0 %v2275_v24  ;;  %1414 = vmatprep.subr.bf16.mxu1 %v2277_v25  ;;  %v2338_v4 = vld [vmem:[#allocation5 + $0x200] ss:$16 sps:$4 sm:$0xff]   ;;  %v2341_v5 = vld [vmem:[#allocation5 + $0x208] ss:$16 sps:$4 sm:$0xff]   ;;  %v2346_v6 = vld [vmem:[#allocation5 + $0x224] ss:$16 sps:$4 sm:$0xff]  }
  0x50   :  { %v2349_v7 = vld [vmem:[#allocation5 + $0x22c] ss:$16 sps:$4 sm:$0xff]   ;;  %v2344_v8 = vld [vmem:[#allocation5 + $0x220] ss:$16 sps:$4 sm:$0xff]   ;;  %v2347_v9 = vld [vmem:[#allocation5 + $0x228] ss:$16 sps:$4 sm:$0xff]  }
  0x51   :  { %v2352_v10 = vld [vmem:[#allocation5 + $0x244] ss:$16 sps:$4 sm:$0xff]   ;;  %v2355_v11 = vld [vmem:[#allocation5 + $0x24c] ss:$16 sps:$4 sm:$0xff]   ;;  %v2350_v12 = vld [vmem:[#allocation5 + $0x240] ss:$16 sps:$4 sm:$0xff]  }
  0x52   :  { %1286 = vmatpush1.bf16.msra.mxu0 %v2279_v26  ;;  %1415 = vmatpush1.bf16.msra.mxu1 %v2280_v27  ;;  %v2353_v13 = vld [vmem:[#allocation5 + $0x248] ss:$16 sps:$4 sm:$0xff]   ;;  %v2358_v14 = vld [vmem:[#allocation5 + $0x264] ss:$16 sps:$4 sm:$0xff]   ;;  %v2361_v15 = vld [vmem:[#allocation5 + $0x26c] ss:$16 sps:$4 sm:$0xff]  }
  0x53   :  { %1287 = vmatprep.subr.bf16.mxu0 %v2281_v28  ;;  %1416 = vmatprep.subr.bf16.mxu1 %v2283_v29  ;;  %v2356_v16 = vld [vmem:[#allocation5 + $0x260] ss:$16 sps:$4 sm:$0xff]   ;;  %v2359_v17 = vld [vmem:[#allocation5 + $0x268] ss:$16 sps:$4 sm:$0xff]   ;;  %v2364_v18 = vld [vmem:[#allocation5 + $0x284] ss:$16 sps:$4 sm:$0xff]  }
  0x54   :  { %v2367_v19 = vld [vmem:[#allocation5 + $0x28c] ss:$16 sps:$4 sm:$0xff]   ;;  %v2362_v20 = vld [vmem:[#allocation5 + $0x280] ss:$16 sps:$4 sm:$0xff]   ;;  %v2365_v21 = vld [vmem:[#allocation5 + $0x288] ss:$16 sps:$4 sm:$0xff]  }
  0x55   :  { %v2370_v22 = vld [vmem:[#allocation5 + $0x2a4] ss:$16 sps:$4 sm:$0xff]   ;;  %v2373_v23 = vld [vmem:[#allocation5 + $0x2ac] ss:$16 sps:$4 sm:$0xff]   ;;  %v2368_v24 = vld [vmem:[#allocation5 + $0x2a0] ss:$16 sps:$4 sm:$0xff]  }
  0x56   :  { %1288 = vmatpush1.bf16.msra.mxu0 %v2285_v30  ;;  %1417 = vmatpush1.bf16.msra.mxu1 %v2286_v31  ;;  %v2371_v25 = vld [vmem:[#allocation5 + $0x2a8] ss:$16 sps:$4 sm:$0xff]   ;;  %v2376_v26 = vld [vmem:[#allocation5 + $0x2c4] ss:$16 sps:$4 sm:$0xff]   ;;  %v2379_v27 = vld [vmem:[#allocation5 + $0x2cc] ss:$16 sps:$4 sm:$0xff]  }
  0x57   :  { %1289 = vmatprep.subr.bf16.mxu0 %v2287_v32  ;;  %1418 = vmatprep.subr.bf16.mxu1 %v2289_v33  ;;  %v2374_v28 = vld [vmem:[#allocation5 + $0x2c0] ss:$16 sps:$4 sm:$0xff]   ;;  %v2377_v29 = vld [vmem:[#allocation5 + $0x2c8] ss:$16 sps:$4 sm:$0xff]   ;;  %v2436_v30 = vld [vmem:[#allocation2 + $0xc] ss:$24 sps:$4 sm:$0xff]  }
  0x58   :  { %v2382_v31 = vld [vmem:[#allocation5 + $0x2e4] ss:$16 sps:$4 sm:$0xff]   ;;  %v2385_v32 = vld [vmem:[#allocation5 + $0x2ec] ss:$16 sps:$4 sm:$0xff]   ;;  %v2380_v33 = vld [vmem:[#allocation5 + $0x2e0] ss:$16 sps:$4 sm:$0xff]  }
  0x59   :  { %v2409_v48 = vld [vmem:[#allocation5 + $0x36c] ss:$16 sps:$4 sm:$0xff]  }
  0x5a   :  { %1290 = vmatpush1.bf16.msra.mxu0 %v2291_v34  ;;  %1419 = vmatpush1.bf16.msra.mxu1 %v2292_v35  ;;  %v2383_v34 = vld [vmem:[#allocation5 + $0x2e8] ss:$16 sps:$4 sm:$0xff]   ;;  %v2388_v35 = vld [vmem:[#allocation5 + $0x304] ss:$16 sps:$4 sm:$0xff]  }
  0x5b   :  { %1291 = vmatprep.subr.bf16.mxu0 %v2293_v36  ;;  %1420 = vmatprep.subr.bf16.mxu1 %v2295_v37  ;;  %v2391_v36 = vld [vmem:[#allocation5 + $0x30c] ss:$16 sps:$4 sm:$0xff]   ;;  %v2386_v37 = vld [vmem:[#allocation5 + $0x300] ss:$16 sps:$4 sm:$0xff]  }
  0x5e   :  { %1292 = vmatpush1.bf16.msra.mxu0 %v2297_v38  ;;  %1421 = vmatpush1.bf16.msra.mxu1 %v2298_v39  ;;  %v2389_v38 = vld [vmem:[#allocation5 + $0x308] ss:$16 sps:$4 sm:$0xff]   ;;  %v2394_v39 = vld [vmem:[#allocation5 + $0x324] ss:$16 sps:$4 sm:$0xff]  }
  0x5f   :  { %1293 = vmatprep.subr.bf16.mxu0 %v2299_v40  ;;  %1422 = vmatprep.subr.bf16.mxu1 %v2301_v41  ;;  %v2397_v40 = vld [vmem:[#allocation5 + $0x32c] ss:$16 sps:$4 sm:$0xff]   ;;  %v2392_v41 = vld [vmem:[#allocation5 + $0x320] ss:$16 sps:$4 sm:$0xff]  }
  0x62   :  { %1294 = vmatpush1.bf16.msra.mxu0 %v2303_v42  ;;  %1423 = vmatpush1.bf16.msra.mxu1 %v2304_v43  ;;  %v2395_v42 = vld [vmem:[#allocation5 + $0x328] ss:$16 sps:$4 sm:$0xff]   ;;  %v2400_v43 = vld [vmem:[#allocation5 + $0x344] ss:$16 sps:$4 sm:$0xff]  }
  0x63   :  { %1295 = vmatprep.subr.bf16.mxu0 %v2305_v44  ;;  %1424 = vmatprep.subr.bf16.mxu1 %v2307_v45  ;;  %v2403_v44 = vld [vmem:[#allocation5 + $0x34c] ss:$16 sps:$4 sm:$0xff]   ;;  %v2398_v45 = vld [vmem:[#allocation5 + $0x340] ss:$16 sps:$4 sm:$0xff]  }
  0x66   :  { %1296 = vmatpush1.bf16.msra.mxu0 %v2309_v46  ;;  %1425 = vmatpush1.bf16.msra.mxu1 %v2310_v47  ;;  %v2401_v46 = vld [vmem:[#allocation5 + $0x348] ss:$16 sps:$4 sm:$0xff]   ;;  %v2406_v47 = vld [vmem:[#allocation5 + $0x364] ss:$16 sps:$4 sm:$0xff]  }
  0x67   :  { %1297 = vmatprep.subr.bf16.mxu0 %v2311_v49  ;;  %1426 = vmatprep.subr.bf16.mxu1 %v2313_v50  ;;  %v2404_v49 = vld [vmem:[#allocation5 + $0x360] ss:$16 sps:$4 sm:$0xff]   ;;  %v2407_v50 = vld [vmem:[#allocation5 + $0x368] ss:$16 sps:$4 sm:$0xff]  }
  0x6a   :  { %1298 = vmatpush1.bf16.msra.mxu0 %v2315_v51  ;;  %1427 = vmatpush1.bf16.msra.mxu1 %v2316_v52  ;;  %v2412_v51 = vld [vmem:[#allocation5 + $0x384] ss:$16 sps:$4 sm:$0xff]   ;;  %v2415_v52 = vld [vmem:[#allocation5 + $0x38c] ss:$16 sps:$4 sm:$0xff]  }
  0x6b   :  { %1299 = vmatprep.subr.bf16.mxu0 %v2317_v53  ;;  %1428 = vmatprep.subr.bf16.mxu1 %v2319_v54  ;;  %v2410_v53 = vld [vmem:[#allocation5 + $0x380] ss:$16 sps:$4 sm:$0xff]   ;;  %v2413_v54 = vld [vmem:[#allocation5 + $0x388] ss:$16 sps:$4 sm:$0xff]  }
  0x6e   :  { %1300 = vmatpush1.bf16.msra.mxu0 %v2321_v55  ;;  %1429 = vmatpush1.bf16.msra.mxu1 %v2322_v56  ;;  %v2418_v55 = vld [vmem:[#allocation5 + $0x3a4] ss:$16 sps:$4 sm:$0xff]   ;;  %v2421_v56 = vld [vmem:[#allocation5 + $0x3ac] ss:$16 sps:$4 sm:$0xff]  }
  0x6f   :  { %1301 = vmatprep.subr.bf16.mxu0 %v2323_v57  ;;  %1430 = vmatprep.subr.bf16.mxu1 %v2325_v58  ;;  %v2416_v57 = vld [vmem:[#allocation5 + $0x3a0] ss:$16 sps:$4 sm:$0xff]   ;;  %v2419_v58 = vld [vmem:[#allocation5 + $0x3a8] ss:$16 sps:$4 sm:$0xff]  }
  0x72   :  { %1302 = vmatpush1.bf16.msra.mxu0 %v2327_v59  ;;  %1431 = vmatpush1.bf16.msra.mxu1 %v2328_v60  ;;  %v2424_v59 = vld [vmem:[#allocation5 + $0x3c4] ss:$16 sps:$4 sm:$0xff]   ;;  %v2427_v60 = vld [vmem:[#allocation5 + $0x3cc] ss:$16 sps:$4 sm:$0xff]  }
  0x73   :  { %1303 = vmatprep.subr.bf16.mxu0 %v2329_v61  ;;  %1432 = vmatprep.subr.bf16.mxu1 %v2331_v62  ;;  %v2422_v61 = vld [vmem:[#allocation5 + $0x3c0] ss:$16 sps:$4 sm:$0xff]   ;;  %v2425_v62 = vld [vmem:[#allocation5 + $0x3c8] ss:$16 sps:$4 sm:$0xff]  }
  0x76   :  { %1304 = vmatpush1.bf16.msra.mxu0 %v2333_v63  ;;  %1433 = vmatpush1.bf16.msra.mxu1 %v2334_v0  ;;  %v2430_v63 = vld [vmem:[#allocation5 + $0x3e4] ss:$16 sps:$4 sm:$0xff]   ;;  %v2433_v0 = vld [vmem:[#allocation5 + $0x3ec] ss:$16 sps:$4 sm:$0xff]  }
  0x77   :  { %1316 = vmatprep.subr.bf16.mxu0 %v2340_v1  ;;  %1445 = vmatprep.subr.bf16.mxu1 %v2343_v2  ;;  %v2428_v1 = vld [vmem:[#allocation5 + $0x3e0] ss:$16 sps:$4 sm:$0xff]   ;;  %v2431_v2 = vld [vmem:[#allocation5 + $0x3e8] ss:$16 sps:$4 sm:$0xff]  }
  0x79   :  { %1306 = vmatmul.mubr.bf16.vlgmr.msra.gmra.mrb[0].mxu0 %v2335_v3  ;;  %1435 = vmatmul.mubr.bf16.vlgmr.msra.gmra.mrb[0].mxu1 %v2335_v3  ;;  %v2439_v3 = vld [vmem:[#allocation5 + $0x404] ss:$16 sps:$4 sm:$0xff]  }
  0x7a   :  { %1317 = vmatpush1.bf16.msra.mxu0 %v2338_v4  ;;  %1446 = vmatpush1.bf16.msra.mxu1 %v2341_v5  ;;  %v2442_v4 = vld [vmem:[#allocation5 + $0x40c] ss:$16 sps:$4 sm:$0xff]   ;;  %v2434_v5 = vld [vmem:[#allocation2 + $0x8] ss:$24 sps:$4 sm:$0xff]  }
  0x7b   :  { %1318 = vmatprep.subr.bf16.mxu0 %v2346_v6  ;;  %1447 = vmatprep.subr.bf16.mxu1 %v2349_v7  ;;  %v2437_v6 = vld [vmem:[#allocation5 + $0x400] ss:$16 sps:$4 sm:$0xff]   ;;  %v2440_v7 = vld [vmem:[#allocation5 + $0x408] ss:$16 sps:$4 sm:$0xff]  }
  0x7c   :  { %1348 = vmatprep.mubr.bf16.mxu0 %v2436_v30  ;;  %1477 = vmatprep.mubr.bf16.mxu1 %v2436_v30  ;;  %v2478_v30 = vld [vmem:[#allocation5 + $0x4cc] ss:$16 sps:$4 sm:$0xff]  }
  0x7e   :  { %1319 = vmatpush1.bf16.msra.mxu0 %v2344_v8  ;;  %1448 = vmatpush1.bf16.msra.mxu1 %v2347_v9  ;;  %v2445_v8 = vld [vmem:[#allocation5 + $0x424] ss:$16 sps:$4 sm:$0xff]   ;;  %v2448_v9 = vld [vmem:[#allocation5 + $0x42c] ss:$16 sps:$4 sm:$0xff]  }
  0x7f   :  { %1320 = vmatprep.subr.bf16.mxu0 %v2352_v10  ;;  %1449 = vmatprep.subr.bf16.mxu1 %v2355_v11  ;;  %v2443_v10 = vld [vmem:[#allocation5 + $0x420] ss:$16 sps:$4 sm:$0xff]   ;;  %v2446_v11 = vld [vmem:[#allocation5 + $0x428] ss:$16 sps:$4 sm:$0xff]  }
  0x82   :  { %1321 = vmatpush1.bf16.msra.mxu0 %v2350_v12  ;;  %1450 = vmatpush1.bf16.msra.mxu1 %v2353_v13  ;;  %v2535_v12 = vld [vmem:[#allocation2 + $0x14] ss:$24 sps:$4 sm:$0xff]  }
  0x83   :  { %1322 = vmatprep.subr.bf16.mxu0 %v2358_v14  ;;  %1451 = vmatprep.subr.bf16.mxu1 %v2361_v15  ;;  %v2451_v13 = vld [vmem:[#allocation5 + $0x444] ss:$16 sps:$4 sm:$0xff]   ;;  %v2454_v14 = vld [vmem:[#allocation5 + $0x44c] ss:$16 sps:$4 sm:$0xff]   ;;  %v2449_v15 = vld [vmem:[#allocation5 + $0x440] ss:$16 sps:$4 sm:$0xff]  }
  0x86   :  { %1323 = vmatpush1.bf16.msra.mxu0 %v2356_v16  ;;  %1452 = vmatpush1.bf16.msra.mxu1 %v2359_v17  ;;  %v2452_v16 = vld [vmem:[#allocation5 + $0x448] ss:$16 sps:$4 sm:$0xff]   ;;  %v2457_v17 = vld [vmem:[#allocation5 + $0x464] ss:$16 sps:$4 sm:$0xff]  }
  0x87   :  { %1324 = vmatprep.subr.bf16.mxu0 %v2364_v18  ;;  %1453 = vmatprep.subr.bf16.mxu1 %v2367_v19  ;;  %v2460_v18 = vld [vmem:[#allocation5 + $0x46c] ss:$16 sps:$4 sm:$0xff]   ;;  %v2455_v19 = vld [vmem:[#allocation5 + $0x460] ss:$16 sps:$4 sm:$0xff]  }
  0x8a   :  { %1325 = vmatpush1.bf16.msra.mxu0 %v2362_v20  ;;  %1454 = vmatpush1.bf16.msra.mxu1 %v2365_v21  ;;  %v2458_v20 = vld [vmem:[#allocation5 + $0x468] ss:$16 sps:$4 sm:$0xff]   ;;  %v2463_v21 = vld [vmem:[#allocation5 + $0x484] ss:$16 sps:$4 sm:$0xff]  }
  0x8b   :  { %1326 = vmatprep.subr.bf16.mxu0 %v2370_v22  ;;  %1455 = vmatprep.subr.bf16.mxu1 %v2373_v23  ;;  %v2466_v22 = vld [vmem:[#allocation5 + $0x48c] ss:$16 sps:$4 sm:$0xff]   ;;  %v2461_v23 = vld [vmem:[#allocation5 + $0x480] ss:$16 sps:$4 sm:$0xff]  }
  0x8e   :  { %1327 = vmatpush1.bf16.msra.mxu0 %v2368_v24  ;;  %1456 = vmatpush1.bf16.msra.mxu1 %v2371_v25  ;;  %v2464_v24 = vld [vmem:[#allocation5 + $0x488] ss:$16 sps:$4 sm:$0xff]   ;;  %v2469_v25 = vld [vmem:[#allocation5 + $0x4a4] ss:$16 sps:$4 sm:$0xff]  }
  0x8f   :  { %1328 = vmatprep.subr.bf16.mxu0 %v2376_v26  ;;  %1457 = vmatprep.subr.bf16.mxu1 %v2379_v27  ;;  %v2472_v26 = vld [vmem:[#allocation5 + $0x4ac] ss:$16 sps:$4 sm:$0xff]   ;;  %v2467_v27 = vld [vmem:[#allocation5 + $0x4a0] ss:$16 sps:$4 sm:$0xff]  }
  0x92   :  { %1329 = vmatpush1.bf16.msra.mxu0 %v2374_v28  ;;  %1458 = vmatpush1.bf16.msra.mxu1 %v2377_v29  ;;  %v2470_v28 = vld [vmem:[#allocation5 + $0x4a8] ss:$16 sps:$4 sm:$0xff]   ;;  %v2475_v29 = vld [vmem:[#allocation5 + $0x4c4] ss:$16 sps:$4 sm:$0xff]  }
  0x93   :  { %1330 = vmatprep.subr.bf16.mxu0 %v2382_v31  ;;  %1459 = vmatprep.subr.bf16.mxu1 %v2385_v32  ;;  %v2473_v31 = vld [vmem:[#allocation5 + $0x4c0] ss:$16 sps:$4 sm:$0xff]   ;;  %v2476_v32 = vld [vmem:[#allocation5 + $0x4c8] ss:$16 sps:$4 sm:$0xff]  }
  0x96   :  { %1331 = vmatpush1.bf16.msra.mxu0 %v2380_v33  ;;  %1460 = vmatpush1.bf16.msra.mxu1 %v2383_v34  ;;  %v2481_v33 = vld [vmem:[#allocation5 + $0x4e4] ss:$16 sps:$4 sm:$0xff]   ;;  %v2484_v34 = vld [vmem:[#allocation5 + $0x4ec] ss:$16 sps:$4 sm:$0xff]  }
  0x97   :  { %1332 = vmatprep.subr.bf16.mxu0 %v2388_v35  ;;  %1461 = vmatprep.subr.bf16.mxu1 %v2391_v36  ;;  %v2479_v35 = vld [vmem:[#allocation5 + $0x4e0] ss:$16 sps:$4 sm:$0xff]   ;;  %v2482_v36 = vld [vmem:[#allocation5 + $0x4e8] ss:$16 sps:$4 sm:$0xff]  }
  0x9a   :  { %1333 = vmatpush1.bf16.msra.mxu0 %v2386_v37  ;;  %1462 = vmatpush1.bf16.msra.mxu1 %v2389_v38  ;;  %v2487_v37 = vld [vmem:[#allocation5 + $0x504] ss:$16 sps:$4 sm:$0xff]   ;;  %v2490_v38 = vld [vmem:[#allocation5 + $0x50c] ss:$16 sps:$4 sm:$0xff]  }
  0x9b   :  { %1334 = vmatprep.subr.bf16.mxu0 %v2394_v39  ;;  %1463 = vmatprep.subr.bf16.mxu1 %v2397_v40  ;;  %v2485_v39 = vld [vmem:[#allocation5 + $0x500] ss:$16 sps:$4 sm:$0xff]   ;;  %v2488_v40 = vld [vmem:[#allocation5 + $0x508] ss:$16 sps:$4 sm:$0xff]  }
  0x9e   :  { %1335 = vmatpush1.bf16.msra.mxu0 %v2392_v41  ;;  %1464 = vmatpush1.bf16.msra.mxu1 %v2395_v42  ;;  %v2493_v41 = vld [vmem:[#allocation5 + $0x524] ss:$16 sps:$4 sm:$0xff]   ;;  %v2496_v42 = vld [vmem:[#allocation5 + $0x52c] ss:$16 sps:$4 sm:$0xff]  }
  0x9f   :  { %1336 = vmatprep.subr.bf16.mxu0 %v2400_v43  ;;  %1465 = vmatprep.subr.bf16.mxu1 %v2403_v44  ;;  %v2491_v43 = vld [vmem:[#allocation5 + $0x520] ss:$16 sps:$4 sm:$0xff]   ;;  %v2494_v44 = vld [vmem:[#allocation5 + $0x528] ss:$16 sps:$4 sm:$0xff]  }
  0xa2   :  { %1337 = vmatpush1.bf16.msra.mxu0 %v2398_v45  ;;  %1466 = vmatpush1.bf16.msra.mxu1 %v2401_v46  ;;  %v2499_v45 = vld [vmem:[#allocation5 + $0x544] ss:$16 sps:$4 sm:$0xff]   ;;  %v2502_v46 = vld [vmem:[#allocation5 + $0x54c] ss:$16 sps:$4 sm:$0xff]  }
  0xa3   :  { %1338 = vmatprep.subr.bf16.mxu0 %v2406_v47  ;;  %1467 = vmatprep.subr.bf16.mxu1 %v2409_v48  ;;  %v2497_v47 = vld [vmem:[#allocation5 + $0x540] ss:$16 sps:$4 sm:$0xff]   ;;  %v2500_v48 = vld [vmem:[#allocation5 + $0x548] ss:$16 sps:$4 sm:$0xff]  }
  0xa6   :  { %1339 = vmatpush1.bf16.msra.mxu0 %v2404_v49  ;;  %1468 = vmatpush1.bf16.msra.mxu1 %v2407_v50  ;;  %v2505_v49 = vld [vmem:[#allocation5 + $0x564] ss:$16 sps:$4 sm:$0xff]   ;;  %v2508_v50 = vld [vmem:[#allocation5 + $0x56c] ss:$16 sps:$4 sm:$0xff]  }
  0xa7   :  { %1340 = vmatprep.subr.bf16.mxu0 %v2412_v51  ;;  %1469 = vmatprep.subr.bf16.mxu1 %v2415_v52  ;;  %v2503_v51 = vld [vmem:[#allocation5 + $0x560] ss:$16 sps:$4 sm:$0xff]   ;;  %v2506_v52 = vld [vmem:[#allocation5 + $0x568] ss:$16 sps:$4 sm:$0xff]  }
  0xaa   :  { %1341 = vmatpush1.bf16.msra.mxu0 %v2410_v53  ;;  %1470 = vmatpush1.bf16.msra.mxu1 %v2413_v54  ;;  %v2511_v53 = vld [vmem:[#allocation5 + $0x584] ss:$16 sps:$4 sm:$0xff]   ;;  %v2514_v54 = vld [vmem:[#allocation5 + $0x58c] ss:$16 sps:$4 sm:$0xff]  }
  0xab   :  { %1342 = vmatprep.subr.bf16.mxu0 %v2418_v55  ;;  %1471 = vmatprep.subr.bf16.mxu1 %v2421_v56  ;;  %v2509_v55 = vld [vmem:[#allocation5 + $0x580] ss:$16 sps:$4 sm:$0xff]   ;;  %v2512_v56 = vld [vmem:[#allocation5 + $0x588] ss:$16 sps:$4 sm:$0xff]  }
  0xae   :  { %1343 = vmatpush1.bf16.msra.mxu0 %v2416_v57  ;;  %1472 = vmatpush1.bf16.msra.mxu1 %v2419_v58  ;;  %v2517_v57 = vld [vmem:[#allocation5 + $0x5a4] ss:$16 sps:$4 sm:$0xff]   ;;  %v2520_v58 = vld [vmem:[#allocation5 + $0x5ac] ss:$16 sps:$4 sm:$0xff]  }
  0xaf   :  { %1344 = vmatprep.subr.bf16.mxu0 %v2424_v59  ;;  %1473 = vmatprep.subr.bf16.mxu1 %v2427_v60  ;;  %v2515_v59 = vld [vmem:[#allocation5 + $0x5a0] ss:$16 sps:$4 sm:$0xff]   ;;  %v2518_v60 = vld [vmem:[#allocation5 + $0x5a8] ss:$16 sps:$4 sm:$0xff]  }
  0xb2   :  { %1345 = vmatpush1.bf16.msra.mxu0 %v2422_v61  ;;  %1474 = vmatpush1.bf16.msra.mxu1 %v2425_v62  ;;  %v2523_v61 = vld [vmem:[#allocation5 + $0x5c4] ss:$16 sps:$4 sm:$0xff]   ;;  %v2526_v62 = vld [vmem:[#allocation5 + $0x5cc] ss:$16 sps:$4 sm:$0xff]  }
  0xb3   :  { %1346 = vmatprep.subr.bf16.mxu0 %v2430_v63  ;;  %1475 = vmatprep.subr.bf16.mxu1 %v2433_v0  ;;  %v2521_v63 = vld [vmem:[#allocation5 + $0x5c0] ss:$16 sps:$4 sm:$0xff]   ;;  %v2524_v0 = vld [vmem:[#allocation5 + $0x5c8] ss:$16 sps:$4 sm:$0xff]  }
  0xb6   :  { %1347 = vmatpush1.bf16.msra.mxu0 %v2428_v1  ;;  %1476 = vmatpush1.bf16.msra.mxu1 %v2431_v2  ;;  %v2529_v1 = vld [vmem:[#allocation5 + $0x5e4] ss:$16 sps:$4 sm:$0xff]   ;;  %v2532_v2 = vld [vmem:[#allocation5 + $0x5ec] ss:$16 sps:$4 sm:$0xff]  }
  0xb7   :  { %1359 = vmatprep.subr.bf16.mxu0 %v2439_v3  ;;  %1488 = vmatprep.subr.bf16.mxu1 %v2442_v4  ;;  %v2527_v3 = vld [vmem:[#allocation5 + $0x5e0] ss:$16 sps:$4 sm:$0xff]   ;;  %v2530_v4 = vld [vmem:[#allocation5 + $0x5e8] ss:$16 sps:$4 sm:$0xff]  }
  0xb9   :  { %1349 = vmatmul.mubr.bf16.vlgmr.msra.gmra.mrb[0].mxu0 %v2434_v5  ;;  %1478 = vmatmul.mubr.bf16.vlgmr.msra.gmra.mrb[0].mxu1 %v2434_v5  ;;  %v2536_v5 = vld [vmem:[#allocation7 + $0x40] sm:$0xff]  }
  0xba   :  { %1360 = vmatpush1.bf16.msra.mxu0 %v2437_v6  ;;  %1489 = vmatpush1.bf16.msra.mxu1 %v2440_v7  ;;  %v2537_v6 = vld [vmem:[#allocation7 + $0xc0] sm:$0xff]  }
  0xbb   :  { %1361 = vmatprep.subr.bf16.mxu0 %v2445_v8  ;;  %1490 = vmatprep.subr.bf16.mxu1 %v2448_v9  ;;  %v2533_v7 = vld [vmem:[#allocation2 + $0x10] ss:$24 sps:$4 sm:$0xff]  }
  0xbc   :  { %1391 = vmatprep.mubr.bf16.mxu0 %v2535_v12  ;;  %1520 = vmatprep.mubr.bf16.mxu1 %v2535_v12  ;;  %v2538_v8 = vld [vmem:[#allocation7] sm:$0xff]   ;;  %v2542_v12 = vld [vmem:[#allocation7 + $0x8] sm:$0xff]  }
  0xbd   :  { %v2539_v9 = vld [vmem:[#allocation7 + $0x80] sm:$0xff]  }
  0xbe   :  { %1362 = vmatpush1.bf16.msra.mxu0 %v2443_v10  ;;  %1491 = vmatpush1.bf16.msra.mxu1 %v2446_v11  ;;  %v2540_v10 = vld [vmem:[#allocation7 + $0x48] sm:$0xff]  }
  0xbf   :  { %1363 = vmatprep.subr.bf16.mxu0 %v2451_v13  ;;  %1492 = vmatprep.subr.bf16.mxu1 %v2454_v14  ;;  %v2541_v11 = vld [vmem:[#allocation7 + $0xc8] sm:$0xff]   ;;  %v2544_v14 = vld [vmem:[#allocation7 + $0x50] sm:$0xff]  }
  0xc0   :  { %v2543_v13 = vld [vmem:[#allocation7 + $0x88] sm:$0xff]  }
  0xc2   :  { %1364 = vmatpush1.bf16.msra.mxu0 %v2449_v15  ;;  %1493 = vmatpush1.bf16.msra.mxu1 %v2452_v16  ;;  %v2545_v15 = vld [vmem:[#allocation7 + $0xd0] sm:$0xff]  }
  0xc3   :  { %1365 = vmatprep.subr.bf16.mxu0 %v2457_v17  ;;  %1494 = vmatprep.subr.bf16.mxu1 %v2460_v18  ;;  %v2546_v16 = vld [vmem:[#allocation7 + $0x10] sm:$0xff]   ;;  %v2548_v18 = vld [vmem:[#allocation7 + $0x58] sm:$0xff]  }
  0xc4   :  { %v2547_v17 = vld [vmem:[#allocation7 + $0x90] sm:$0xff]  }
  0xc6   :  { %1366 = vmatpush1.bf16.msra.mxu0 %v2455_v19  ;;  %1495 = vmatpush1.bf16.msra.mxu1 %v2458_v20  ;;  %v2549_v19 = vld [vmem:[#allocation7 + $0xd8] sm:$0xff]  }
  0xc7   :  { %1367 = vmatprep.subr.bf16.mxu0 %v2463_v21  ;;  %1496 = vmatprep.subr.bf16.mxu1 %v2466_v22  ;;  %v2550_v20 = vld [vmem:[#allocation7 + $0x18] sm:$0xff]   ;;  %v2552_v22 = vld [vmem:[#allocation7 + $0x60] sm:$0xff]  }
  0xc8   :  { %v2551_v21 = vld [vmem:[#allocation7 + $0x98] sm:$0xff]  }
  0xca   :  { %1368 = vmatpush1.bf16.msra.mxu0 %v2461_v23  ;;  %1497 = vmatpush1.bf16.msra.mxu1 %v2464_v24  ;;  %v2553_v23 = vld [vmem:[#allocation7 + $0xe0] sm:$0xff]  }
  0xcb   :  { %1369 = vmatprep.subr.bf16.mxu0 %v2469_v25  ;;  %1498 = vmatprep.subr.bf16.mxu1 %v2472_v26  ;;  %v2554_v24 = vld [vmem:[#allocation7 + $0x20] sm:$0xff]   ;;  %v2556_v26 = vld [vmem:[#allocation7 + $0x68] sm:$0xff]  }
  0xcc   :  { %v2555_v25 = vld [vmem:[#allocation7 + $0xa0] sm:$0xff]  }
  0xce   :  { %1370 = vmatpush1.bf16.msra.mxu0 %v2467_v27  ;;  %1499 = vmatpush1.bf16.msra.mxu1 %v2470_v28  ;;  %v2557_v27 = vld [vmem:[#allocation7 + $0xe8] sm:$0xff]  }
  0xcf   :  { %1371 = vmatprep.subr.bf16.mxu0 %v2475_v29  ;;  %1500 = vmatprep.subr.bf16.mxu1 %v2478_v30  ;;  %v2558_v28 = vld [vmem:[#allocation7 + $0x28] sm:$0xff]   ;;  %v2560_v30 = vld [vmem:[#allocation7 + $0x70] sm:$0xff]  }
  0xd0   :  { %v2559_v29 = vld [vmem:[#allocation7 + $0xa8] sm:$0xff]  }
  0xd2   :  { %1372 = vmatpush1.bf16.msra.mxu0 %v2473_v31  ;;  %1501 = vmatpush1.bf16.msra.mxu1 %v2476_v32  ;;  %v2561_v31 = vld [vmem:[#allocation7 + $0xf0] sm:$0xff]  }
  0xd3   :  { %1373 = vmatprep.subr.bf16.mxu0 %v2481_v33  ;;  %1502 = vmatprep.subr.bf16.mxu1 %v2484_v34  ;;  %v2562_v32 = vld [vmem:[#allocation7 + $0x30] sm:$0xff]   ;;  %v2564_v34 = vld [vmem:[#allocation7 + $0x78] sm:$0xff]  }
  0xd4   :  { %v2563_v33 = vld [vmem:[#allocation7 + $0xb0] sm:$0xff]  }
  0xd6   :  { %1374 = vmatpush1.bf16.msra.mxu0 %v2479_v35  ;;  %1503 = vmatpush1.bf16.msra.mxu1 %v2482_v36  ;;  %v2565_v35 = vld [vmem:[#allocation7 + $0xf8] sm:$0xff]  }
  0xd7   :  { %1375 = vmatprep.subr.bf16.mxu0 %v2487_v37  ;;  %1504 = vmatprep.subr.bf16.mxu1 %v2490_v38  ;;  %v2566_v36 = vld [vmem:[#allocation7 + $0x38] sm:$0xff]   ;;  %v263_v38 = vlaneseq }
  0xd8   :  { %v2567_v37 = vld [vmem:[#allocation7 + $0xb8] sm:$0xff]  }
  0xda   :  { %1376 = vmatpush1.bf16.msra.mxu0 %v2485_v39  ;;  %1505 = vmatpush1.bf16.msra.mxu1 %v2488_v40  ;;  %v264_v39 = vshrl.u32 %v263_v38, 7 }
  0xdb   :  { %1377 = vmatprep.subr.bf16.mxu0 %v2493_v41  ;;  %1506 = vmatprep.subr.bf16.mxu1 %v2496_v42  ;;  %v261_v42 = vld [vmem:[%s2768_s2] sm:$0xf] }
  0xdc   :  { %v265_v40 = vsub.s32 0, %v264_v39  ;;  %v273_v41 = vsub.s32 2, %v264_v39 }
  0xde   :  { %1378 = vmatpush1.bf16.msra.mxu0 %v2491_v43  ;;  %1507 = vmatpush1.bf16.msra.mxu1 %v2494_v44  ;;  %v269_v43 = vsub.s32 1, %v264_v39  ;;  %v277_v44 = vsub.s32 3, %v264_v39 }
  0xdf   :  { %1379 = vmatprep.subr.bf16.mxu0 %v2499_v45  ;;  %1508 = vmatprep.subr.bf16.mxu1 %v2502_v46  ;;  %v266_v45 = vrot.slane %v261_v42, %v265_v40  ;;  %v274_v46 = vrot.slane %v261_v42, %v273_v41 }
  0xe2   :  { %1380 = vmatpush1.bf16.msra.mxu0 %v2497_v47  ;;  %1509 = vmatpush1.bf16.msra.mxu1 %v2500_v48  ;;  %v270_v47 = vrot.slane %v261_v42, %v269_v43  ;;  %v278_v48 = vrot.slane %v261_v42, %v277_v44 }
  0xe3   :  { %1381 = vmatprep.subr.bf16.mxu0 %v2505_v49  ;;  %1510 = vmatprep.subr.bf16.mxu1 %v2508_v50 }
  0xe6   :  { %1382 = vmatpush1.bf16.msra.mxu0 %v2503_v51  ;;  %1511 = vmatpush1.bf16.msra.mxu1 %v2506_v52 }
  0xe7   :  { %1383 = vmatprep.subr.bf16.mxu0 %v2511_v53  ;;  %1512 = vmatprep.subr.bf16.mxu1 %v2514_v54 }
  0xea   :  { %1384 = vmatpush1.bf16.msra.mxu0 %v2509_v55  ;;  %1513 = vmatpush1.bf16.msra.mxu1 %v2512_v56 }
  0xeb   :  { %1385 = vmatprep.subr.bf16.mxu0 %v2517_v57  ;;  %1514 = vmatprep.subr.bf16.mxu1 %v2520_v58 }
  0xee   :  { %1386 = vmatpush1.bf16.msra.mxu0 %v2515_v59  ;;  %1515 = vmatpush1.bf16.msra.mxu1 %v2518_v60 }
  0xef   :  { %1387 = vmatprep.subr.bf16.mxu0 %v2523_v61  ;;  %1516 = vmatprep.subr.bf16.mxu1 %v2526_v62 }
  0xf2   :  { %1388 = vmatpush1.bf16.msra.mxu0 %v2521_v63  ;;  %1517 = vmatpush1.bf16.msra.mxu1 %v2524_v0 }
  0xf3   :  { %1389 = vmatprep.subr.bf16.mxu0 %v2529_v1  ;;  %1518 = vmatprep.subr.bf16.mxu1 %v2532_v2 }
  0xf6   :  { %1390 = vmatpush1.bf16.msra.mxu0 %v2527_v3  ;;  %1519 = vmatpush1.bf16.msra.mxu1 %v2530_v4 }
  0xf7   :  { %2159 = vmatprep.subr.bf16.mxu0 %v2536_v5  ;;  %2181 = vmatprep.subr.bf16.mxu1 %v2537_v6 }
  0xf9   :  { %1392 = vmatmul.mubr.bf16.vlgmr.msra.gmra.mrb[0].mxu0 %v2533_v7  ;;  %1521 = vmatmul.mubr.bf16.vlgmr.msra.gmra.mrb[0].mxu1 %v2533_v7 }
  0xfa   :  { %2160 = vmatpush3.bf16.msra.mxu0 %v2538_v8  ;;  %2182 = vmatpush3.bf16.msra.mxu1 %v2539_v9 }
  0xfb   :  { %2161 = vmatprep.subr.bf16.mxu0 %v2540_v10  ;;  %2183 = vmatprep.subr.bf16.mxu1 %v2541_v11 }
  0xfe   :  { %2162 = vmatpush3.bf16.msra.mxu0 %v2542_v12  ;;  %2184 = vmatpush3.bf16.msra.mxu1 %v2543_v13 }
  0xff   :  { %2163 = vmatprep.subr.bf16.mxu0 %v2544_v14  ;;  %2185 = vmatprep.subr.bf16.mxu1 %v2545_v15  ;;  %v2126_v15 = vld [vmem:[%s2770_s4] ss:$0 sm:$0xff]  ;;  %s2679_s4 = smov [#allocation8]  }
 0x100   :  { %s1915_s10 = sshll.u32 %s2679_s4, 4  ;;  %s1916_s10 = int_to_ptr.vmem [resolvable:$true] %s1915_s10 }
 0x101   :  { %s2642_s11 = scalar_lea.vmem %s1916_s10, 256  ;;  %p2647_p11 = scmp.lt.s32.totalorder %s1916_s10, %s1916_s10 }
 0x102   :  { %2164 = vmatpush3.bf16.msra.mxu0 %v2546_v16  ;;  %2186 = vmatpush3.bf16.msra.mxu1 %v2547_v17  ;;  %p2643_p10 = scmp.ne.s32.totalorder %s1916_s10, %s2642_s11  ;;  %p2648_p12 = scmp.lt.s32.totalorder %s2642_s11, %s2642_s11 }
 0x103   :  { %2165 = vmatprep.subr.bf16.mxu0 %v2548_v18  ;;  %2187 = vmatprep.subr.bf16.mxu1 %v2549_v19 }
 0x104   :  { %p2649_p13 = por %p2648_p12, %p2647_p11 }
 0x106   :  { %2166 = vmatpush3.bf16.msra.mxu0 %v2550_v20  ;;  %2188 = vmatpush3.bf16.msra.mxu1 %v2551_v21  ;;  %p2650_p0 = pnand %p2649_p13, %p2643_p10 }
 0x107   :  { %2167 = vmatprep.subr.bf16.mxu0 %v2552_v22  ;;  %2189 = vmatprep.subr.bf16.mxu1 %v2553_v23 }
 0x10a   :  { %2168 = vmatpush3.bf16.msra.mxu0 %v2554_v24  ;;  %2190 = vmatpush3.bf16.msra.mxu1 %v2555_v25 }
 0x10b   :  { %2169 = vmatprep.subr.bf16.mxu0 %v2556_v26  ;;  %2191 = vmatprep.subr.bf16.mxu1 %v2557_v27 }
 0x10e   :  { %2170 = vmatpush3.bf16.msra.mxu0 %v2558_v28  ;;  %2192 = vmatpush3.bf16.msra.mxu1 %v2559_v29 }
 0x10f   :  { %2171 = vmatprep.subr.bf16.mxu0 %v2560_v30  ;;  %2193 = vmatprep.subr.bf16.mxu1 %v2561_v31 }
 0x112   :  { %2172 = vmatpush3.bf16.msra.mxu0 %v2562_v32  ;;  %2194 = vmatpush3.bf16.msra.mxu1 %v2563_v33 }
 0x113   :  { %2173 = vmatprep.subr.bf16.mxu0 %v2564_v34  ;;  %2195 = vmatprep.subr.bf16.mxu1 %v2565_v35 }
 0x116   :  { %2174 = vmatpush3.bf16.msra.mxu0 %v2566_v36  ;;  %2196 = vmatpush3.bf16.msra.mxu1 %v2567_v37 }
 0x1cc   :  { %v1393_v49 = vpop.f32.mrb[0].mxu0  ;;  %v1522_v50 = vpop.f32.mrb[0].mxu1 }
 0x1cd   :  { %v2203_v51 = vadd.f32 %v1393_v49, %v266_v45  ;;  %v2207_v52 = vadd.f32 %v1522_v50, %v274_v46  ;;  %v1395_v53 = vpop.f32.mrb[1].mxu0  ;;  %v1524_v54 = vpop.f32.mrb[1].mxu1 }
 0x1ce   :  { %v2204_v55 = vadd.f32 %v1395_v53, %v270_v47  ;;  %v2208_v56 = vadd.f32 %v1524_v54, %v278_v48  ;;  %v1397_v57 = vpop.f32.mrb[2].mxu0  ;;  %v1526_v58 = vpop.f32.mrb[2].mxu1 }
 0x1cf   :  { %v2205_v59 = vadd.f32 %v1397_v57, %v266_v45  ;;  %v2209_v60 = vadd.f32 %v1526_v58, %v274_v46  ;;  %v1399_v61 = vpop.f32.mrb[3].mxu0  ;;  %v1528_v62 = vpop.f32.mrb[3].mxu1  ;;  %v1531_v1 = vmax.f32 %v2203_v51, 0.0  ;;  %v1533_v2 = vmax.f32 %v2207_v52, 0.0 }
 0x1d0   :  { %v2206_v63 = vadd.f32 %v1399_v61, %v270_v47  ;;  %v2210_v0 = vadd.f32 %v1528_v62, %v278_v48  ;;  %v1532_v5 = vmax.f32 %v2204_v55, 0.0  ;;  %v1534_v6 = vmax.f32 %v2208_v56, 0.0 }
 0x1d1   :  { %v1535_v3 = vmax.f32 %v2205_v59, 0.0  ;;  %v1537_v4 = vmax.f32 %v2209_v60, 0.0 }
 0x1d2   :  { %v1536_v7 = vmax.f32 %v2206_v63, 0.0  ;;  %v1538_v8 = vmax.f32 %v2210_v0, 0.0 }
 0x1d3   :  { %v1539_v9 = vpack.c.bf16 %v1535_v3, %v1531_v1  ;;  %v1541_v10 = vpack.c.bf16 %v1537_v4, %v1533_v2 }
 0x1d4   :  { %v1540_v11 = vpack.c.bf16 %v1536_v7, %v1532_v5  ;;  %v1542_v12 = vpack.c.bf16 %v1538_v8, %v1534_v6 }
 0x1d6   :  { %1838 = vmatprep.mubr.bf16.mxu0 %v1540_v11  ;;  %1879 = vmatprep.mubr.bf16.mxu1 %v1542_v12 }
 0x1d7   :  { %1839 = vmatmul.mubr.bf16.vlgmr.msra.gmra.mrb[4].mxu0 %v1539_v9  ;;  %1880 = vmatmul.mubr.bf16.vlgmr.msra.gmra.mrb[4].mxu1 %v1541_v10 }
 0x2aa   :  { %v2175_v13 = vpop.f32.mrb[4].mxu0  ;;  %v2197_v14 = vpop.f32.mrb[4].mxu1 }
 0x2ab   :  { %v2176_v16 = vpop.f32.mrb[5].mxu0  ;;  %v2198_v17 = vpop.f32.mrb[5].mxu1 }
 0x2ac   :  { %v2177_v18 = vadd.f32 %v2176_v16, %v2175_v13  ;;  %v2199_v19 = vadd.f32 %v2198_v17, %v2197_v14  ;;  %v2178_v20 = vpop.f32.mrb[6].mxu0  ;;  %v2200_v21 = vpop.f32.mrb[6].mxu1 }
 0x2ad   :  { %v2179_v22 = vpop.f32.mrb[7].mxu0  ;;  %v2201_v23 = vpop.f32.mrb[7].mxu1 }
 0x2ae   :  { %v1841_v24 = vadd.f32 %v2177_v18, %v2126_v15  ;;  %v2180_v25 = vadd.f32 %v2179_v22, %v2178_v20  ;;  %v2202_v26 = vadd.f32 %v2201_v23, %v2200_v21 }
 0x2b0   :  { %v1844_v27 = vadd.f32 %v2180_v25, %v2126_v15  ;;  %v1882_v28 = vadd.f32 %v2199_v19, %v1841_v24 }
 0x2b2   :  { %1888 = vmax.xlane.f32.xlu0 %v1882_v28  ;;  %v1885_v29 = vadd.f32 %v2202_v26, %v1844_v27 }
 0x2b6   :  { %1890 = vmax.xlane.f32.xlu0 %v1885_v29 }
 0x33f   :  { %v1889_v30 = vpop.xlane.xlu0 %1888 }
 0x340   :  { %v1892_v31 = vsub.f32 %v1882_v28, %v1889_v30 }
 0x342   :  { %v1894_v32 = vmul.f32 1.442695, %v1892_v31 }
 0x343   :  { %v1891_v33 = vpop.xlane.xlu0 %1890 }
 0x344   :  { %v1893_v34 = vsub.f32 %v1885_v29, %v1891_v33  ;;  %2568 = vpow2.f32 %v1894_v32 }
 0x346   :  { %v1896_v35 = vmul.f32 1.442695, %v1893_v34 }
 0x348   :  { %2570 = vpow2.f32 %v1896_v35 }
 0x34e   :  { %v2569_v36 = vpop.eup %2568 }
 0x34f   :  { %1898 = vadd.xlane.f32.xlu1 %v2569_v36 }
 0x352   :  { %v2571_v37 = vpop.eup %2570 }
 0x353   :  { %1900 = vadd.xlane.f32.xlu1 %v2571_v37 }
 0x3dc   :  { %v1899_v38 = vpop.xlane.xlu1 %1898 }
 0x3dd   :  { %2572 = vlog2.f32 %v1899_v38 }
 0x3e0   :  { %v1901_v39 = vpop.xlane.xlu1 %1900 }
 0x3e1   :  { %2574 = vlog2.f32 %v1901_v39 }
 0x3e7   :  { %v2573_v40 = vpop.eup %2572 }
 0x3e8   :  { %v1903_v41 = vmul.f32 0.6931472, %v2573_v40 }
 0x3ea   :  { %v1906_v42 = vsub.f32 %v1892_v31, %v1903_v41 }
 0x3eb   :  { %v2575_v43 = vpop.eup %2574 }
 0x3ec   :  { %1908 = vst [vmem:[#allocation8] sm:$0xff] %v1906_v42  ;;  %v1905_v44 = vmul.f32 0.6931472, %v2575_v43 }
 0x3ee   :  { %v1907_v45 = vsub.f32 %v1893_v34, %v1905_v44 }
 0x3f0   :  { %1909 = vst [vmem:[#allocation8 + $0x8] sm:$0xff] %v1907_v45 }
 0x3f1   :  { %2653 = shalt.err (!%p2650_p0)
}
 0x3f2   :  { %s2654_s14 = scalar_lea.hbm %s2771_s5, 256 }
 0x3f3   :  { %p2655_p1 = scmp.ne.s32.totalorder %s2771_s5, %s2654_s14  ;;  %p2658_p2 = scmp.lt.u32.totalorder %s2654_s14, %s2771_s5 }
 0x3f5   :  { %p2660_p3 = pnand %p2658_p2, %p2655_p1 }
 0x3f7   :  { %2663 = shalt.err (!%p2660_p3)
}
 0x3f8   :  { %s2680_s18 = smov 128   ;;  %s2681_s19 = smov 8  }
 0x3f9   :  { %1921 = dma.vmem_to_hbm [thread:$0]  %s1916_s10, 256, %s2771_s5, [#allocation4], %s2680_s18, %s2680_s18, %s2681_s19  }
 0x3fa   :  { %2668 = dma.done.wait [#allocation4], 256  }
 0x3fb   :  { %2669 = vsyncadd [#allocation4], 4294967040 }
 0x3fc   :  { %1925 = vsyncpa [#allocation3], 1 }
 0x3fd   :  { %1926 = vsyncpa [#allocation6], 1 }
 0x3fe   :  { %1927 = vsyncpa [#allocation4], 1 }

</bundles_post_ra>
